<compile_context>
chip_gen: v5e
topology: v5e:2x2
jax: 0.10.0
libtpu: 0.0.40
codegen_flags: <defaults>
</compile_context>

<pallas_src>
import jax
import jax.numpy as jnp
from jax.experimental import pallas as pl
from jax.experimental.pallas import tpu as pltpu


# Lane-aligned (zero-padded) layer widths.
D_IN = 8        # observation dim (kept; equals full array dim, so legal block)
H1 = 128        # pad 120 -> 128
H2 = 256        # pad 240 -> 256
H3 = 128        # pad 120 -> 128
D_OUT = 1       # value head


def _round_up(n, m):
    return ((n + m - 1) // m) * m


def _pad_to(a, rows, cols):
    r, c = a.shape
    return jnp.pad(a, ((0, rows - r), (0, cols - c)))


def critic_kernel(x_ref,
                  w1_ref, b1_ref,
                  w2_ref, b2_ref,
                  w3_ref, b3_ref,
                  w4_ref, b4_ref,
                  o_ref):
    """One batch tile: 4 fused matmuls, f32 accumulation, f32 epilogue."""
    cdt = w1_ref.dtype  # compute dtype for MXU operands (f32 or bf16)

    h = x_ref[...]  # already cast to cdt in the wrapper
    h = jnp.dot(h, w1_ref[...], preferred_element_type=jnp.float32) + b1_ref[...]
    h = jnp.maximum(h, 0.0)

    h = jnp.dot(h.astype(cdt), w2_ref[...],
                preferred_element_type=jnp.float32) + b2_ref[...]
    h = jnp.maximum(h, 0.0)

    h = jnp.dot(h.astype(cdt), w3_ref[...],
                preferred_element_type=jnp.float32) + b3_ref[...]
    h = jnp.maximum(h, 0.0)

    y = jnp.dot(h.astype(cdt), w4_ref[...],
                preferred_element_type=jnp.float32) + b4_ref[...]

    # sigmoid = 1 / (1 + exp(-y)); exp rides the EUP slot, reciprocal is exact.
    o_ref[...] = pl.reciprocal(1.0 + jnp.exp(-y), approx=False)


def critic_forward(x, params, *, block_rows=512, compute_dtype=jnp.float32):
    """x: (B, 8) float32.  params: dict of (in,out) weights and (1,out) biases.

    Returns (B, 1) float32 state-values, matching the PyTorch Critic forward.
    `compute_dtype=jnp.bfloat16` enables the bf16 MXU path (f32 accumulate).
    """
    B = x.shape[0]
    cdt = jnp.dtype(compute_dtype)

    # Zero-pad weights to lane-aligned shapes; biases stay f32 (post-acc add).
    w1 = _pad_to(params["w1"], D_IN, H1).astype(cdt)
    b1 = _pad_to(params["b1"], 1, H1)
    w2 = _pad_to(params["w2"], H1, H2).astype(cdt)
    b2 = _pad_to(params["b2"], 1, H2)
    w3 = _pad_to(params["w3"], H2, H3).astype(cdt)
    b3 = _pad_to(params["b3"], 1, H3)
    w4 = _pad_to(params["w4"], H3, D_OUT).astype(cdt)
    b4 = params["b4"]  # (1, 1)

    # Batch tiling: tm multiple of 8; pad B so the grid divides evenly.
    tm = min(block_rows, _round_up(B, 8))
    b_pad = _round_up(B, tm)
    x_c = x.astype(cdt)
    if b_pad != B:
        x_c = jnp.pad(x_c, ((0, b_pad - B), (0, 0)))

    grid = (pl.cdiv(b_pad, tm),)

    # Weights/biases: constant block index -> fetched once, VMEM-resident.
    def resident(a):
        return pl.BlockSpec(a.shape, lambda i: (0,) * a.ndim)

    out = pl.pallas_call(
        critic_kernel,
        out_shape=jax.ShapeDtypeStruct((b_pad, 1), jnp.float32),
        grid=grid,
        in_specs=[
            pl.BlockSpec((tm, D_IN), lambda i: (i, 0)),
            resident(w1), resident(b1),
            resident(w2), resident(b2),
            resident(w3), resident(b3),
            resident(w4), resident(b4),
        ],
        out_specs=pl.BlockSpec((tm, 1), lambda i: (i, 0)),
        compiler_params=pltpu.CompilerParams(
            dimension_semantics=("parallel",)),
    )(x_c, w1, b1, w2, b2, w3, b3, w4, b4)

    return out[:B]


def init_params(key):
    """Deterministic synthetic init matching the shapes in Critic.__init__.

    PyTorch nn.Linear uses U(-1/sqrt(fan_in), 1/sqrt(fan_in)); weights stored
    as (in, out) so the kernel computes y = x @ W + b."""
    dims = [(8, 120), (120, 240), (240, 120), (120, 1)]
    params = {}
    for i, (fan_in, fan_out) in enumerate(dims, start=1):
        key, kw, kb = jax.random.split(key, 3)
        bound = 1.0 / jnp.sqrt(jnp.float32(fan_in))
        params[f"w{i}"] = jax.random.uniform(
            kw, (fan_in, fan_out), jnp.float32, -bound, bound)
        params[f"b{i}"] = jax.random.uniform(
            kb, (1, fan_out), jnp.float32, -bound, bound)
    return params


def critic_reference(x, params):
    """Pure-JAX reference for correctness checking."""
    h = jnp.maximum(x @ params["w1"] + params["b1"], 0.0)
    h = jnp.maximum(h @ params["w2"] + params["b2"], 0.0)
    h = jnp.maximum(h @ params["w3"] + params["b3"], 0.0)
    return jax.nn.sigmoid(h @ params["w4"] + params["b4"])


if __name__ == "__main__":
    key = jax.random.PRNGKey(0)
    key, kx = jax.random.split(key)

    # Small serving-style batch (LunarLander observation dim is 8).
    B = 8
    x = jax.random.normal(kx, (B, 8), jnp.float32)
    params = init_params(key)

    out = jax.block_until_ready(critic_forward(x, params))
    ref = critic_reference(x, params)
    assert out.shape == (B, 1), out.shape
    assert jnp.allclose(out, ref, atol=1e-5, rtol=1e-5), (out, ref)

    # Larger batch exercising multi-tile grid + batch padding (B not a
    # multiple of the 512-row tile).
    B2 = 1064
    x2 = jax.random.normal(jax.random.PRNGKey(1), (B2, 8), jnp.float32)
    out2 = jax.block_until_ready(critic_forward(x2, params, block_rows=512))
    ref2 = critic_reference(x2, params)
    assert out2.shape == (B2, 1), out2.shape
    assert jnp.allclose(out2, ref2, atol=1e-5, rtol=1e-5)

    # bf16 MXU path (v6e/v7x throughput mode): f32 accumulate + f32 epilogue,
    # so only operand rounding error remains.
    out3 = jax.block_until_ready(
        critic_forward(x2, params, block_rows=512, compute_dtype=jnp.bfloat16))
    assert out3.shape == (B2, 1)
    assert float(jnp.max(jnp.abs(out3 - ref2))) < 5e-2

    print("KERNEL_OK")
</pallas_src>

<mosaic_0001>
module attributes {stable_mosaic.version = 11 : i64} {
  func.func @critic_kernel(%arg0: i32, %arg1: memref<8x8xf32, #tpu.memory_space<vmem>>, %arg2: memref<8x128xf32, #tpu.memory_space<vmem>>, %arg3: memref<1x128xf32, #tpu.memory_space<vmem>>, %arg4: memref<128x256xf32, #tpu.memory_space<vmem>>, %arg5: memref<1x256xf32, #tpu.memory_space<vmem>>, %arg6: memref<256x128xf32, #tpu.memory_space<vmem>>, %arg7: memref<1x128xf32, #tpu.memory_space<vmem>>, %arg8: memref<128x1xf32, #tpu.memory_space<vmem>>, %arg9: memref<1x1xf32, #tpu.memory_space<vmem>>, %arg10: memref<8x1xf32, #tpu.memory_space<vmem>>) attributes {dimension_semantics = [#tpu.dimension_semantics<parallel>], iteration_bounds = array<i64: 1>, scalar_prefetch = 0 : i64, scratch_operands = 0 : i64, tpu.core_type = #tpu.core_type<tc>, window_params = [{transform_indices = @transform_0, window_bounds = array<i64: 8, 8>}, {pipeline_mode = #tpu.pipeline_mode<synchronous>, transform_indices = @transform_1, window_bounds = array<i64: 8, 128>}, {pipeline_mode = #tpu.pipeline_mode<synchronous>, transform_indices = @transform_2, window_bounds = array<i64: 1, 128>}, {pipeline_mode = #tpu.pipeline_mode<synchronous>, transform_indices = @transform_3, window_bounds = array<i64: 128, 256>}, {pipeline_mode = #tpu.pipeline_mode<synchronous>, transform_indices = @transform_4, window_bounds = array<i64: 1, 256>}, {pipeline_mode = #tpu.pipeline_mode<synchronous>, transform_indices = @transform_5, window_bounds = array<i64: 256, 128>}, {pipeline_mode = #tpu.pipeline_mode<synchronous>, transform_indices = @transform_6, window_bounds = array<i64: 1, 128>}, {pipeline_mode = #tpu.pipeline_mode<synchronous>, transform_indices = @transform_7, window_bounds = array<i64: 128, 1>}, {pipeline_mode = #tpu.pipeline_mode<synchronous>, transform_indices = @transform_8, window_bounds = array<i64: 1, 1>}, {transform_indices = @transform_9, window_bounds = array<i64: 8, 1>}]} {
    %c0 = arith.constant 0 : index
    %c0_0 = arith.constant 0 : index
    %0 = vector.load %arg1[%c0, %c0_0] : memref<8x8xf32, #tpu.memory_space<vmem>>, vector<8x8xf32>
    %c0_1 = arith.constant 0 : index
    %c0_2 = arith.constant 0 : index
    %1 = vector.load %arg2[%c0_1, %c0_2] : memref<8x128xf32, #tpu.memory_space<vmem>>, vector<8x128xf32>
    %cst = arith.constant dense<0.000000e+00> : vector<8x128xf32>
    %2 = tpu.matmul %0, %1, %cst {dimension_numbers = #tpu.dot_dimension_numbers<[1], [0], [0], [1], [0, 0, 1, 1], [], []>} : vector<8x8xf32>, vector<8x128xf32>, vector<8x128xf32> -> vector<8x128xf32>
    %c0_3 = arith.constant 0 : index
    %c0_4 = arith.constant 0 : index
    %3 = vector.load %arg3[%c0_3, %c0_4] : memref<1x128xf32, #tpu.memory_space<vmem>>, vector<1x128xf32>
    %4 = vector.broadcast %3 : vector<1x128xf32> to vector<8x128xf32>
    %5 = arith.addf %2, %4 : vector<8x128xf32>
    %cst_5 = arith.constant 0.000000e+00 : f32
    %6 = vector.broadcast %cst_5 : f32 to vector<8x128xf32>
    %7 = arith.maximumf %5, %6 : vector<8x128xf32>
    %c0_6 = arith.constant 0 : index
    %c0_7 = arith.constant 0 : index
    %8 = vector.load %arg4[%c0_6, %c0_7] : memref<128x256xf32, #tpu.memory_space<vmem>>, vector<128x256xf32>
    %cst_8 = arith.constant dense<0.000000e+00> : vector<8x256xf32>
    %9 = tpu.matmul %7, %8, %cst_8 {dimension_numbers = #tpu.dot_dimension_numbers<[1], [0], [0], [1], [0, 0, 1, 1], [], []>} : vector<8x128xf32>, vector<128x256xf32>, vector<8x256xf32> -> vector<8x256xf32>
    %c0_9 = arith.constant 0 : index
    %c0_10 = arith.constant 0 : index
    %10 = vector.load %arg5[%c0_9, %c0_10] : memref<1x256xf32, #tpu.memory_space<vmem>>, vector<1x256xf32>
    %11 = vector.broadcast %10 : vector<1x256xf32> to vector<8x256xf32>
    %12 = arith.addf %9, %11 : vector<8x256xf32>
    %cst_11 = arith.constant 0.000000e+00 : f32
    %13 = vector.broadcast %cst_11 : f32 to vector<8x256xf32>
    %14 = arith.maximumf %12, %13 : vector<8x256xf32>
    %c0_12 = arith.constant 0 : index
    %c0_13 = arith.constant 0 : index
    %15 = vector.load %arg6[%c0_12, %c0_13] : memref<256x128xf32, #tpu.memory_space<vmem>>, vector<256x128xf32>
    %cst_14 = arith.constant dense<0.000000e+00> : vector<8x128xf32>
    %16 = tpu.matmul %14, %15, %cst_14 {dimension_numbers = #tpu.dot_dimension_numbers<[1], [0], [0], [1], [0, 0, 1, 1], [], []>} : vector<8x256xf32>, vector<256x128xf32>, vector<8x128xf32> -> vector<8x128xf32>
    %c0_15 = arith.constant 0 : index
    %c0_16 = arith.constant 0 : index
    %17 = vector.load %arg7[%c0_15, %c0_16] : memref<1x128xf32, #tpu.memory_space<vmem>>, vector<1x128xf32>
    %18 = vector.broadcast %17 : vector<1x128xf32> to vector<8x128xf32>
    %19 = arith.addf %16, %18 : vector<8x128xf32>
    %cst_17 = arith.constant 0.000000e+00 : f32
    %20 = vector.broadcast %cst_17 : f32 to vector<8x128xf32>
    %21 = arith.maximumf %19, %20 : vector<8x128xf32>
    %c0_18 = arith.constant 0 : index
    %c0_19 = arith.constant 0 : index
    %22 = vector.load %arg8[%c0_18, %c0_19] : memref<128x1xf32, #tpu.memory_space<vmem>>, vector<128x1xf32>
    %cst_20 = arith.constant dense<0.000000e+00> : vector<8x1xf32>
    %23 = tpu.matmul %21, %22, %cst_20 {dimension_numbers = #tpu.dot_dimension_numbers<[1], [0], [0], [1], [0, 0, 1, 1], [], []>} : vector<8x128xf32>, vector<128x1xf32>, vector<8x1xf32> -> vector<8x1xf32>
    %c0_21 = arith.constant 0 : index
    %c0_22 = arith.constant 0 : index
    %24 = vector.load %arg9[%c0_21, %c0_22] : memref<1x1xf32, #tpu.memory_space<vmem>>, vector<1x1xf32>
    %25 = vector.broadcast %24 : vector<1x1xf32> to vector<8x1xf32>
    %26 = arith.addf %23, %25 : vector<8x1xf32>
    %cst_23 = arith.constant 0.000000e+00 : f32
    %27 = vector.broadcast %cst_23 : f32 to vector<8x1xf32>
    %28 = arith.subf %27, %26 : vector<8x1xf32>
    %29 = math.exp %28 : vector<8x1xf32>
    %cst_24 = arith.constant 1.000000e+00 : f32
    %30 = vector.broadcast %cst_24 : f32 to vector<8x1xf32>
    %31 = arith.addf %30, %29 : vector<8x1xf32>
    %32 = tpu.reciprocal %31 : vector<8x1xf32> -> vector<8x1xf32>
    %c0_25 = arith.constant 0 : index
    %c0_26 = arith.constant 0 : index
    %33 = vector.load %arg10[%c0_25, %c0_26] : memref<8x1xf32, #tpu.memory_space<vmem>>, vector<8x1xf32>
    tpu.vector_store %arg10[%c0_25, %c0_26], %32 {strides = array<i32>} : memref<8x1xf32, #tpu.memory_space<vmem>>, vector<8x1xf32>,
    return
  }
  func.func @transform_0(%arg0: i32) -> (i32, i32) {
    %c0_i32 = arith.constant 0 : i32
    %c0_i32_0 = arith.constant 0 : i32
    return %arg0, %c0_i32 : i32, i32
  }
  func.func @transform_1(%arg0: i32) -> (i32, i32) {
    %c0_i32 = arith.constant 0 : i32
    %c0_i32_0 = arith.constant 0 : i32
    %c0_i32_1 = arith.constant 0 : i32
    return %c0_i32, %c0_i32_0 : i32, i32
  }
  func.func @transform_2(%arg0: i32) -> (i32, i32) {
    %c0_i32 = arith.constant 0 : i32
    %c0_i32_0 = arith.constant 0 : i32
    %c0_i32_1 = arith.constant 0 : i32
    return %c0_i32, %c0_i32_0 : i32, i32
  }
  func.func @transform_3(%arg0: i32) -> (i32, i32) {
    %c0_i32 = arith.constant 0 : i32
    %c0_i32_0 = arith.constant 0 : i32
    %c0_i32_1 = arith.constant 0 : i32
    return %c0_i32, %c0_i32_0 : i32, i32
  }
  func.func @transform_4(%arg0: i32) -> (i32, i32) {
    %c0_i32 = arith.constant 0 : i32
    %c0_i32_0 = arith.constant 0 : i32
    %c0_i32_1 = arith.constant 0 : i32
    return %c0_i32, %c0_i32_0 : i32, i32
  }
  func.func @transform_5(%arg0: i32) -> (i32, i32) {
    %c0_i32 = arith.constant 0 : i32
    %c0_i32_0 = arith.constant 0 : i32
    %c0_i32_1 = arith.constant 0 : i32
    return %c0_i32, %c0_i32_0 : i32, i32
  }
  func.func @transform_6(%arg0: i32) -> (i32, i32) {
    %c0_i32 = arith.constant 0 : i32
    %c0_i32_0 = arith.constant 0 : i32
    %c0_i32_1 = arith.constant 0 : i32
    return %c0_i32, %c0_i32_0 : i32, i32
  }
  func.func @transform_7(%arg0: i32) -> (i32, i32) {
    %c0_i32 = arith.constant 0 : i32
    %c0_i32_0 = arith.constant 0 : i32
    %c0_i32_1 = arith.constant 0 : i32
    return %c0_i32, %c0_i32_0 : i32, i32
  }
  func.func @transform_8(%arg0: i32) -> (i32, i32) {
    %c0_i32 = arith.constant 0 : i32
    %c0_i32_0 = arith.constant 0 : i32
    %c0_i32_1 = arith.constant 0 : i32
    return %c0_i32, %c0_i32_0 : i32, i32
  }
  func.func @transform_9(%arg0: i32) -> (i32, i32) {
    %c0_i32 = arith.constant 0 : i32
    %c0_i32_0 = arith.constant 0 : i32
    return %arg0, %c0_i32 : i32, i32
  }
}

</mosaic_0001>

<bundles_post_ra>
// kernel: tpu_custom_call.1
= control target key start
LH: loop header
LB: loop body
LE: loop exit
PB: predicated region body
PF: predicated region fallthrough
CT: control target
= control target key end

     0   :  { %s517_s0 = inlined_call_operand.vmem [shape: f32[8,8], index: 0, kind: input, shape index: {}]   ;;  %s518_s1 = inlined_call_operand.vmem [shape: f32[8,128], index: 1, kind: input, shape index: {}]   ;;  %s519_s2 = inlined_call_operand.vmem [shape: f32[1,128], index: 2, kind: input, shape index: {}]   ;;  %s520_s3 = inlined_call_operand.hbm [shape: f32[128,256], index: 3, kind: input, shape index: {}]   ;;  %s521_s4 = inlined_call_operand.vmem [shape: f32[1,256], index: 4, kind: input, shape index: {}]   ;;  %s522_s5 = inlined_call_operand.hbm [shape: f32[256,128], index: 5, kind: input, shape index: {}]   ;;  %s523_s6 = inlined_call_operand.vmem [shape: f32[1,128], index: 6, kind: input, shape index: {}]   ;;  %s524_s7 = inlined_call_operand.vmem [shape: f32[128,1], index: 7, kind: input, shape index: {}]   ;;  %s525_s8 = inlined_call_operand.<no memory space> [shape: f32[1,1], index: 8, kind: input, shape index: {}]   ;;  %s526_s9 = inlined_call_operand.vmem [shape: f32[8,1], index: 9, kind: output, shape index: {}]  }
   0x1   :  { %v14_v0 = vstv %s525_s8 }
   0x2   :  { %15 = vst [vmem:[#allocation2] sm:$0x1] %v14_v0 }
   0x3   :  { %16 = vsyncpa [#allocation4], 0  ;;  %s28_s13 = sshll.u32 %s520_s3, 4  ;;  %s29_s13 = int_to_ptr.hbm [resolvable:$true] %s28_s13 }
   0x4   :  { %17 = vsyncpa [#allocation6], 0  ;;  %s386_s14 = smov [#allocation3]   ;;  %s43_s18 = sshll.u32 %s522_s5, 4  ;;  %s44_s18 = int_to_ptr.hbm [resolvable:$true] %s43_s18 }
   0x5   :  { %s30_s15 = sshll.u32 %s386_s14, 4  ;;  %s387_s19 = smov 256   ;;  %s31_s15 = int_to_ptr.vmem [resolvable:$true] %s30_s15 }
   0x6   :  { %s388_s20 = smov 16   ;;  %s389_s8 = smov [#allocation5]  }
   0x7   :  { %36 = dma.hbm_to_vmem [thread:$0]  %s29_s13, 4096, %s31_s15, [#allocation4], %s387_s19, %s387_s19, %s388_s20  }
   0x8   :  { %s45_s21 = sshll.u32 %s389_s8, 4  ;;  %s390_s22 = smov 128   ;;  %s46_s21 = int_to_ptr.vmem [resolvable:$true] %s45_s21 }
   0x9   :  { %s391_s23 = smov 8  }
   0xa   :  { %51 = dma.hbm_to_vmem [thread:$0]  %s44_s18, 4096, %s46_s21, [#allocation6], %s390_s22, %s390_s22, %s391_s23  }
   0xb   :  { %382 = dma.done.wait [#allocation4], 4096  }
   0xc   :  { %383 = vsyncadd [#allocation4], 4294963200 }
   0xd   :  { %384 = dma.done.wait [#allocation6], 4096  }
   0xe   :  { %385 = vsyncadd [#allocation6], 4294963200  ;;  %vm72_vm0 = vcmask 64512   ;;  %v67_v1 = vld [vmem:[%s518_s1] sm:$0xff]  ;;  %v127_v3 = vld [vmem:[#allocation3 + $0xf0] sm:$0xff]  ;;  %vm312_vm4 = vcmask 7168  }
   0xf   :  { %v66_v2 = vld [vmem:[%s517_s0] sm:$0xff]  ;;  %91 = vmatpush.msra.mxu0 %v67_v1  ;;  %135 = vmatpush.msra.mxu1 %v127_v3  ;;  %v126_v6 = vld [vmem:[#allocation3 + $0xe8] sm:$0xff]  ;;  %v123_v7 = vld [vmem:[#allocation3 + $0xd0] sm:$0xff] }
  0x10   :  { %v128_v4 = vld [vmem:[#allocation3 + $0xf8] sm:$0xff]  ;;  %v125_v5 = vld [vmem:[#allocation3 + $0xe0] sm:$0xff]  ;;  %320 = vmatmul.msk.f32.vlgmr.msra.gmra.mxu0 %vm72_vm0, %v66_v2  ;;  %v122_v10 = vld [vmem:[#allocation3 + $0xc8] sm:$0xff] }
  0x11   :  { %155 = vmatpush.msra.mxu2 %v128_v4  ;;  %136 = vmatpush.msra.mxu1 %v125_v5  ;;  %v124_v8 = vld [vmem:[#allocation3 + $0xd8] sm:$0xff]  ;;  %v121_v9 = vld [vmem:[#allocation3 + $0xc0] sm:$0xff]  ;;  %v119_v11 = vld [vmem:[#allocation3 + $0xb0] sm:$0xff] }
  0x12   :  { %v120_v12 = vld [vmem:[#allocation3 + $0xb8] sm:$0xff]  ;;  %v117_v13 = vld [vmem:[#allocation3 + $0xa0] sm:$0xff]  ;;  %v118_v14 = vld [vmem:[#allocation3 + $0xa8] sm:$0xff] }
  0x13   :  { %156 = vmatpush.msra.mxu2 %v126_v6  ;;  %137 = vmatpush.msra.mxu1 %v123_v7  ;;  %v115_v15 = vld [vmem:[#allocation3 + $0x90] sm:$0xff]  ;;  %v116_v16 = vld [vmem:[#allocation3 + $0x98] sm:$0xff]  ;;  %v113_v17 = vld [vmem:[#allocation3 + $0x80] sm:$0xff] }
  0x14   :  { %v114_v18 = vld [vmem:[#allocation3 + $0x88] sm:$0xff]  ;;  %v111_v19 = vld [vmem:[#allocation3 + $0x70] sm:$0xff]  ;;  %v112_v20 = vld [vmem:[#allocation3 + $0x78] sm:$0xff] }
  0x15   :  { %157 = vmatpush.msra.mxu2 %v124_v8  ;;  %138 = vmatpush.msra.mxu1 %v121_v9  ;;  %v109_v21 = vld [vmem:[#allocation3 + $0x60] sm:$0xff]  ;;  %v110_v22 = vld [vmem:[#allocation3 + $0x68] sm:$0xff]  ;;  %v107_v23 = vld [vmem:[#allocation3 + $0x50] sm:$0xff] }
  0x16   :  { %v108_v24 = vld [vmem:[#allocation3 + $0x58] sm:$0xff]  ;;  %v105_v25 = vld [vmem:[#allocation3 + $0x40] sm:$0xff]  ;;  %v106_v26 = vld [vmem:[#allocation3 + $0x48] sm:$0xff] }
  0x17   :  { %158 = vmatpush.msra.mxu2 %v122_v10  ;;  %139 = vmatpush.msra.mxu1 %v119_v11  ;;  %v103_v27 = vld [vmem:[#allocation3 + $0x30] sm:$0xff]  ;;  %v104_v28 = vld [vmem:[#allocation3 + $0x38] sm:$0xff]  ;;  %v101_v29 = vld [vmem:[#allocation3 + $0x20] sm:$0xff] }
  0x18   :  { %v102_v30 = vld [vmem:[#allocation3 + $0x28] sm:$0xff]  ;;  %v99_v31 = vld [vmem:[#allocation3 + $0x10] sm:$0xff]  ;;  %v100_v32 = vld [vmem:[#allocation3 + $0x18] sm:$0xff] }
  0x19   :  { %159 = vmatpush.msra.mxu2 %v120_v12  ;;  %140 = vmatpush.msra.mxu1 %v117_v13  ;;  %v97_v33 = vld [vmem:[#allocation3] sm:$0xff]  ;;  %v98_v34 = vld [vmem:[#allocation3 + $0x8] sm:$0xff]  ;;  %v192_v35 = vld [vmem:[#allocation5 + $0x78] sm:$0xff] }
  0x1a   :  { %v191_v36 = vld [vmem:[#allocation5 + $0x70] sm:$0xff]  ;;  %213 = vmatpush.msra.mxu3 %v192_v35  ;;  %v208_v37 = vld [vmem:[#allocation5 + $0xf8] sm:$0xff]  ;;  %v190_v38 = vld [vmem:[#allocation5 + $0x68] sm:$0xff] }
  0x1b   :  { %160 = vmatpush.msra.mxu2 %v118_v14  ;;  %141 = vmatpush.msra.mxu1 %v115_v15  ;;  %v207_v39 = vld [vmem:[#allocation5 + $0xf0] sm:$0xff]  ;;  %v206_v40 = vld [vmem:[#allocation5 + $0xe8] sm:$0xff]  ;;  %v189_v41 = vld [vmem:[#allocation5 + $0x60] sm:$0xff] }
  0x1c   :  { %233 = vmatpush.msrb.mxu0 %v208_v37  ;;  %214 = vmatpush.msra.mxu3 %v191_v36  ;;  %v205_v42 = vld [vmem:[#allocation5 + $0xe0] sm:$0xff]  ;;  %v188_v43 = vld [vmem:[#allocation5 + $0x58] sm:$0xff]  ;;  %v187_v45 = vld [vmem:[#allocation5 + $0x50] sm:$0xff] }
  0x1d   :  { %161 = vmatpush.msra.mxu2 %v116_v16  ;;  %142 = vmatpush.msra.mxu1 %v113_v17  ;;  %v204_v44 = vld [vmem:[#allocation5 + $0xd8] sm:$0xff]  ;;  %v203_v46 = vld [vmem:[#allocation5 + $0xd0] sm:$0xff]  ;;  %v186_v47 = vld [vmem:[#allocation5 + $0x48] sm:$0xff] }
  0x1e   :  { %234 = vmatpush.msrb.mxu0 %v207_v39  ;;  %215 = vmatpush.msra.mxu3 %v190_v38  ;;  %v202_v48 = vld [vmem:[#allocation5 + $0xc8] sm:$0xff]  ;;  %v185_v49 = vld [vmem:[#allocation5 + $0x40] sm:$0xff]  ;;  %v184_v51 = vld [vmem:[#allocation5 + $0x38] sm:$0xff] }
  0x1f   :  { %162 = vmatpush.msra.mxu2 %v114_v18  ;;  %143 = vmatpush.msra.mxu1 %v111_v19  ;;  %v201_v50 = vld [vmem:[#allocation5 + $0xc0] sm:$0xff]  ;;  %v200_v52 = vld [vmem:[#allocation5 + $0xb8] sm:$0xff]  ;;  %v183_v53 = vld [vmem:[#allocation5 + $0x30] sm:$0xff] }
  0x20   :  { %235 = vmatpush.msrb.mxu0 %v206_v40  ;;  %216 = vmatpush.msra.mxu3 %v189_v41  ;;  %v199_v54 = vld [vmem:[#allocation5 + $0xb0] sm:$0xff]  ;;  %v182_v55 = vld [vmem:[#allocation5 + $0x28] sm:$0xff]  ;;  %v181_v56 = vld [vmem:[#allocation5 + $0x20] sm:$0xff] }
  0x21   :  { %163 = vmatpush.msra.mxu2 %v112_v20  ;;  %144 = vmatpush.msra.mxu1 %v109_v21  ;;  %v180_v57 = vld [vmem:[#allocation5 + $0x18] sm:$0xff]  ;;  %v179_v62 = vld [vmem:[#allocation5 + $0x10] sm:$0xff]  ;;  %v198_v63 = vld [vmem:[#allocation5 + $0xa8] sm:$0xff] }
  0x22   :  { %236 = vmatpush.msrb.mxu0 %v205_v42  ;;  %217 = vmatpush.msra.mxu3 %v188_v43  ;;  %v327_v58 = vld [vmem:[%s519_s2] ss:$0 sm:$0xff]  ;;  %v178_v0 = vld [vmem:[#allocation5 + $0x8] sm:$0xff]  ;;  %v197_v1 = vld [vmem:[#allocation5 + $0xa0] sm:$0xff] }
  0x23   :  { %164 = vmatpush.msra.mxu2 %v110_v22  ;;  %145 = vmatpush.msra.mxu1 %v107_v23  ;;  %v177_v2 = vld [vmem:[#allocation5] sm:$0xff]  ;;  %v196_v3 = vld [vmem:[#allocation5 + $0x98] sm:$0xff]  ;;  %v195_v4 = vld [vmem:[#allocation5 + $0x90] sm:$0xff] }
  0x24   :  { %237 = vmatpush.msrb.mxu0 %v204_v44  ;;  %218 = vmatpush.msra.mxu3 %v187_v45  ;;  %v194_v5 = vld [vmem:[#allocation5 + $0x88] sm:$0xff]  ;;  %v193_v6 = vld [vmem:[#allocation5 + $0x80] sm:$0xff]  ;;  %v269_v7 = vld [vmem:[%s524_s7 + $0x78] sm:$0xff] }
  0x25   :  { %165 = vmatpush.msra.mxu2 %v108_v24  ;;  %146 = vmatpush.msra.mxu1 %v105_v25  ;;  %v268_v8 = vld [vmem:[%s524_s7 + $0x70] sm:$0xff]  ;;  %v267_v9 = vld [vmem:[%s524_s7 + $0x68] sm:$0xff]  ;;  %v266_v10 = vld [vmem:[%s524_s7 + $0x60] sm:$0xff] }
  0x26   :  { %238 = vmatpush.msrb.mxu0 %v203_v46  ;;  %219 = vmatpush.msra.mxu3 %v186_v47  ;;  %v265_v11 = vld [vmem:[%s524_s7 + $0x58] sm:$0xff]  ;;  %v264_v12 = vld [vmem:[%s524_s7 + $0x50] sm:$0xff]  ;;  %v263_v13 = vld [vmem:[%s524_s7 + $0x48] sm:$0xff] }
  0x27   :  { %166 = vmatpush.msra.mxu2 %v106_v26  ;;  %147 = vmatpush.msra.mxu1 %v103_v27  ;;  %v262_v14 = vld [vmem:[%s524_s7 + $0x40] sm:$0xff]  ;;  %v261_v15 = vld [vmem:[%s524_s7 + $0x38] sm:$0xff]  ;;  %v260_v17 = vld [vmem:[%s524_s7 + $0x30] sm:$0xff] }
  0x28   :  { %239 = vmatpush.msrb.mxu0 %v202_v48  ;;  %220 = vmatpush.msra.mxu3 %v185_v49  ;;  %v129_v16 = vld [vmem:[%s521_s4] sm:$0x3]  ;;  %v259_v19 = vld [vmem:[%s524_s7 + $0x28] sm:$0xff] }
  0x29   :  { %167 = vmatpush.msra.mxu2 %v104_v28  ;;  %148 = vmatpush.msra.mxu1 %v101_v29  ;;  %v131_v18 = vperm.slane %v129_v16, 0  ;;  %v258_v20 = vld [vmem:[%s524_s7 + $0x20] sm:$0xff]  ;;  %v132_v24 = vperm.slane %v129_v16, 1  ;;  %v257_v28 = vld [vmem:[%s524_s7 + $0x18] sm:$0xff]  ;;  %v256_v29 = vld [vmem:[%s524_s7 + $0x10] sm:$0xff] }
  0x2a   :  { %240 = vmatpush.msrb.mxu0 %v201_v50  ;;  %221 = vmatpush.msra.mxu3 %v184_v51  ;;  %v329_v38 = vld [vmem:[#allocation2] ss:$0 sm:$0xff] }
  0x2b   :  { %168 = vmatpush.msra.mxu2 %v102_v30  ;;  %149 = vmatpush.msra.mxu1 %v99_v31  ;;  %v255_v30 = vld [vmem:[%s524_s7 + $0x8] sm:$0xff]  ;;  %v254_v31 = vld [vmem:[%s524_s7] sm:$0xff] }
  0x2c   :  { %241 = vmatpush.msrb.mxu0 %v200_v52  ;;  %222 = vmatpush.msra.mxu3 %v183_v53 }
  0x2d   :  { %169 = vmatpush.msra.mxu2 %v100_v32  ;;  %150 = vmatpush.msra.mxu1 %v97_v33  ;;  %v328_v32 = vld [vmem:[%s523_s6] ss:$0 sm:$0xff] }
  0x2e   :  { %242 = vmatpush.msrb.mxu0 %v199_v54  ;;  %223 = vmatpush.msra.mxu3 %v182_v55 }
  0x2f   :  { %170 = vmatpush.msra.mxu2 %v98_v34  ;;  %274 = vmatpush.msrb.mxu1 %v269_v7 }
  0x30   :  { %224 = vmatpush.msra.mxu3 %v181_v56  ;;  %243 = vmatpush.msrb.mxu0 %v198_v63 }
  0x31   :  { %275 = vmatpush.msrb.mxu1 %v268_v8 }
  0x32   :  { %225 = vmatpush.msra.mxu3 %v180_v57  ;;  %244 = vmatpush.msrb.mxu0 %v197_v1 }
  0x33   :  { %276 = vmatpush.msrb.mxu1 %v267_v9 }
  0x34   :  { %226 = vmatpush.msra.mxu3 %v179_v62  ;;  %245 = vmatpush.msrb.mxu0 %v196_v3 }
  0x35   :  { %277 = vmatpush.msrb.mxu1 %v266_v10 }
  0x36   :  { %227 = vmatpush.msra.mxu3 %v178_v0  ;;  %246 = vmatpush.msrb.mxu0 %v195_v4 }
  0x37   :  { %278 = vmatpush.msrb.mxu1 %v265_v11 }
  0x38   :  { %228 = vmatpush.msra.mxu3 %v177_v2  ;;  %247 = vmatpush.msrb.mxu0 %v194_v5 }
  0x39   :  { %279 = vmatpush.msrb.mxu1 %v264_v12 }
  0x3a   :  { %248 = vmatpush.msrb.mxu0 %v193_v6 }
  0x3b   :  { %280 = vmatpush.msrb.mxu1 %v263_v13 }
  0x3d   :  { %281 = vmatpush.msrb.mxu1 %v262_v14 }
  0x3f   :  { %282 = vmatpush.msrb.mxu1 %v261_v15 }
  0x41   :  { %283 = vmatpush.msrb.mxu1 %v260_v17 }
  0x43   :  { %284 = vmatpush.msrb.mxu1 %v259_v19 }
  0x45   :  { %285 = vmatpush.msrb.mxu1 %v258_v20 }
  0x47   :  { %286 = vmatpush.msrb.mxu1 %v257_v28 }
  0x49   :  { %287 = vmatpush.msrb.mxu1 %v256_v29 }
  0x4b   :  { %288 = vmatpush.msrb.mxu1 %v255_v30 }
  0x4d   :  { %289 = vmatpush.msrb.mxu1 %v254_v31 }
  0x8d   :  { %v93_v59 = vpop.f32.mrf.mxu0 }
  0x8e   :  { %v94_v60 = vadd.f32 %v327_v58, %v93_v59 }
  0x90   :  { %v96_v61 = vmax.f32 %v94_v60, 0.0 }
  0x92   :  { %151 = vmatmul.f32.vlgmr.msra.gmra.mxu1 %v96_v61  ;;  %171 = vmatmul.f32.vlgmr.msra.gmra.mxu2 %v96_v61 }
 0x10f   :  { %v152_v21 = vpop.f32.mrf.mxu1 }
 0x110   :  { %v153_v22 = vadd.f32 %v152_v21, %v131_v18 }
 0x112   :  { %v175_v23 = vmax.f32 %v153_v22, 0.0 }
 0x114   :  { %229 = vmatmul.f32.vlgmr.msra.gmra.mxu3 %v175_v23 }
 0x115   :  { %v172_v25 = vpop.f32.mrf.mxu2 }
 0x116   :  { %v173_v26 = vadd.f32 %v172_v25, %v132_v24 }
 0x118   :  { %v176_v27 = vmax.f32 %v173_v26, 0.0 }
 0x11a   :  { %249 = vmatmul.f32.vlgmr.msrb.gmra.mxu0 %v176_v27 }
 0x197   :  { %v230_v33 = vpop.f32.mrf.mxu3  ;;  %v250_v35 = vpop.f32.mrf.mxu0 }
 0x198   :  { %v231_v34 = vadd.f32 %v328_v32, %v230_v33 }
 0x19a   :  { %v251_v36 = vadd.f32 %v250_v35, %v231_v34 }
 0x19c   :  { %v253_v37 = vmax.f32 %v251_v36, 0.0 }
 0x19e   :  { %290 = vmatmul.f32.vlgmr.msrb.gmra.mxu1 %v253_v37 }
 0x21b   :  { %v291_v39 = vpop.f32.mrf.mxu1 }
 0x21c   :  { %v292_v40 = vadd.f32 %v329_v38, %v291_v39 }
 0x21e   :  { %v294_v41 = vsub.f32 0.0, %v292_v40 }
 0x220   :  { %v295_v42 = vmul.f32 1.442695, %v294_v41 }
 0x222   :  { %330 = vpow2.f32 %v295_v42 }
 0x228   :  { %v331_v43 = vpop.eup %330 }
 0x229   :  { %v297_v44 = vadd.f32 1.0, %v331_v43 }
 0x22b   :  { %332 = vrcp.f32 %v297_v44  ;;  %v309_v48 = vand.u32 2147483648, %v297_v44  ;;  %v307_v50 = vand.u32 2147483647, %v297_v44  ;;  %vm303_vm2 = vweird.f32 %v297_v44 }
 0x22d   :  { %v310_v52 = vor.u32 1.1754944e-38, %v309_v48  ;;  %vm308_vm5 = vcmp.eq.f32.partialorder %v307_v50, 8.507059e+37 }
 0x231   :  { %v333_v45 = vpop.eup %332 }
 0x232   :  { %v299_v46 = vmul.f32 %v333_v45, %v297_v44  ;;  %vm304_vm1 = vweird.f32 %v333_v45 }
 0x233   :  { %vm305_vm3 = vmor %vm303_vm2, %vm304_vm1 }
 0x234   :  { %v300_v47 = vsub.f32 1.0, %v299_v46 }
 0x236   :  { %v301_v49 = vmul.f32 %v333_v45, %v300_v47 }
 0x238   :  { %v302_v51 = vadd.f32 %v333_v45, %v301_v49 }
 0x23a   :  { %v306_v53 = vsel %vm305_vm3, %v333_v45, %v302_v51 }
 0x23b   :  { %v311_v54 = vsel %vm308_vm5, %v310_v52, %v306_v53 }
 0x23c   :  { %313 = vst.msk [vmem:[%s526_s9] sm:$0xff] %vm312_vm4, %v311_v54 }
 0x23d   :  { %318 = vsyncpa [#allocation4], 1 }
 0x23e   :  { %319 = vsyncpa [#allocation6], 1 }

</bundles_post_ra>
